<compile_context>
chip_gen: v7x
topology: tpu7x:2x2x1
jax: 0.10.0
libtpu: 0.0.40
codegen_flags: <defaults>
</compile_context>

<pallas_src>
import functools

import jax
import jax.numpy as jnp
import numpy as np
from jax.experimental import pallas as pl
from jax.experimental.pallas import tpu as pltpu

_LANE = 128
_STATIC_K_MAX = 64          # fully unrolled extraction loop (static column stores)
_INT32_MIN = -(2 ** 31)


def _round_up(a, b):
    return -(-a // b) * b


def _sublane_granule(dtype):
    # 8 rows for 32-bit dtypes, 16 for 16-bit, 32 for 8-bit (sublane packing).
    return 8 * max(1, 4 // jnp.dtype(dtype).itemsize)


# ---------------------------------------------------------------------------
# kernels
# ---------------------------------------------------------------------------

def _store_col(o_ref, axis, j, val):
    """Write one extracted column directly into the VMEM output block."""
    idx = [slice(None)] * len(o_ref.shape)
    idx[axis] = pl.ds(j, 1)
    o_ref[tuple(idx)] = val.astype(o_ref.dtype)


def _run_extraction(o_ref, axis, k, init_state, step):
    """Run k extract-one-maximum steps; `step(j, state)` stores column j."""
    if k <= _STATIC_K_MAX:
        # No accumulator is carried any more (columns are stored directly into
        # o_ref), so the only loop-carried value is the serial knock-out state:
        # a static unroll keeps every column store at a static offset without
        # growing the live set.
        state = init_state
        for j in range(k):
            state = step(j, state)
    else:
        # TODO(synk): for k >> 64 a two-level (per-chunk local top-k + merge)
        # scheme would cut the O(k*n) cross-lane reductions.
        jax.lax.fori_loop(0, k, step, init_state)


def _kmax_kernel_packed(x_ref, o_ref, *, k, n, axis, idx_bits, encode, decode):
    """Top-k with ONE cross-lane/sublane (XLU) reduction per extracted element.

    Values are mapped to an order-preserving int32 key whose low `idx_bits`
    bits hold the reversed position along `axis`; a single max reduction
    yields both the winning value and a unique position to knock out, so
    duplicate values are emitted the correct number of times (torch.topk value
    semantics).
    """
    int_min = jnp.int32(_INT32_MIN)
    idx_mask = jnp.int32((1 << idx_bits) - 1)
    x = x_ref[...]
    pos = jax.lax.broadcasted_iota(jnp.int32, x.shape, axis)
    key0 = encode(x) + (jnp.int32(n - 1) - pos)

    def step(j, key):
        w = jnp.max(key, axis=axis, keepdims=True)          # single XLU reduction
        _store_col(o_ref, axis, j, decode(w - (w & idx_mask)))
        return jnp.where(key == w, int_min, key)            # knock out exactly ONE position

    _run_extraction(o_ref, axis, k, key0, step)


def _kmax_kernel_pair(x_ref, o_ref, *, k, n, axis, cmp_dtype, sentinel):
    """Top-k via max + first-occurrence (two XLU reductions per element).

    Exact for f32 and 32-bit integers; narrow floats that miss the packed path
    are compared in f32 (one upfront upcast).
    """
    # TODO(synk): rows containing NaN diverge from torch.topk (the same NaN is
    # re-emitted k times instead of NaNs sorting first).
    x0 = x_ref[...].astype(cmp_dtype)
    pos = jax.lax.broadcasted_iota(jnp.int32, x0.shape, axis)
    knock = jnp.asarray(sentinel, cmp_dtype)

    def step(j, x):
        m = jnp.max(x, axis=axis, keepdims=True)
        first = jnp.min(jnp.where(x == m, pos, jnp.int32(n)),
                        axis=axis, keepdims=True)
        _store_col(o_ref, axis, j, m)
        return jnp.where(pos == first, knock, x)            # knock out exactly ONE position

    _run_extraction(o_ref, axis, k, x0, step)


# --- order-preserving key encodings ----------------------------------------

def _encode_float_key(x):
    # bf16/f16 upcast to f32 leaves the low mantissa bits zero, so the low bits
    # of the order-preserving integer key are free for the position index.
    bits = pltpu.bitcast(x.astype(jnp.float32), jnp.int32)
    return jnp.where(bits >= 0, bits, jnp.int32(_INT32_MIN) - bits)


def _decode_float_key(vk):
    # TODO(synk): -0.0 is canonicalized to +0.0 (numerically equal to torch.topk,
    # different bit pattern).
    bits = jnp.where(vk >= 0, vk, jnp.int32(_INT32_MIN) - vk)
    return pltpu.bitcast(bits, jnp.float32)


def _encode_int_key(x, *, idx_bits):
    return x.astype(jnp.int32) << idx_bits


def _decode_int_key(vk, *, idx_bits):
    return vk >> idx_bits                                    # arithmetic shift


# ---------------------------------------------------------------------------
# kernel / tiling selection
# ---------------------------------------------------------------------------

def _select_kernel(dtype, n, k, axis):
    dt = jnp.dtype(dtype)
    common = dict(k=k, n=n, axis=axis)

    def packed_float(idx_bits):
        return functools.partial(_kmax_kernel_packed, idx_bits=idx_bits,
                                 encode=_encode_float_key,
                                 decode=_decode_float_key, **common)

    def packed_int(idx_bits):
        return functools.partial(
            _kmax_kernel_packed, idx_bits=idx_bits,
            encode=functools.partial(_encode_int_key, idx_bits=idx_bits),
            decode=functools.partial(_decode_int_key, idx_bits=idx_bits),
            **common)

    def pair(cmp_dtype, sentinel):
        return functools.partial(_kmax_kernel_pair, cmp_dtype=cmp_dtype,
                                 sentinel=sentinel, **common)

    if dt == jnp.bfloat16:
        return packed_float(16) if n <= (1 << 16) else pair(jnp.float32, -np.inf)
    if dt == jnp.float16:
        return packed_float(13) if n <= (1 << 13) else pair(jnp.float32, -np.inf)
    if dt in (jnp.dtype(jnp.int8), jnp.dtype(jnp.uint8)) and n <= (1 << 23):
        return packed_int(23)
    if dt in (jnp.dtype(jnp.int16), jnp.dtype(jnp.uint16)) and n <= (1 << 15):
        return packed_int(15)
    if jnp.issubdtype(dt, jnp.unsignedinteger):
        return pair(jnp.uint32, 0)
    if jnp.issubdtype(dt, jnp.integer):
        return pair(jnp.int32, _INT32_MIN)
    if jnp.issubdtype(dt, jnp.floating):
        return pair(jnp.float32, -np.inf)
    raise NotImplementedError(f"kmax_pooling: unsupported dtype {dt}")


def _vmem_plan():
    """(per-step tile budget, scoped-vmem-limit cap) sized per TPU generation."""
    cap = 64 * 1024 * 1024                       # assume v7x (smallest VMEM) if unknown
    try:
        cap = int(getattr(pltpu.get_tpu_info(), "vmem_capacity_bytes", cap))
    except Exception:
        pass
    tile_budget = max(4 * 1024 * 1024, min(cap // 4, 32 * 1024 * 1024))
    limit_cap = min(cap // 2, 64 * 1024 * 1024)  # <=32 MiB on v7x, <=64 MiB on v5e/v6e
    return tile_budget, limit_cap


def _choose_row_tile(r, per_row_bytes, granule, budget, target_blocks=4, cap_rows=2048):
    if r <= granule:
        return r                                 # one block; block dim == full array dim
    r_pad = _round_up(r, granule)
    max_tile = max(granule, (budget // max(per_row_bytes, 1)) // granule * granule)
    max_tile = min(max_tile, _round_up(cap_rows, granule))
    if max_tile >= r_pad:
        # Whole problem fits one block: split into >= target_blocks roughly even
        # granule-aligned blocks so both v7x TensorCores / the DMA pipeline have work.
        blocks = min(target_blocks, r_pad // granule)
        return min(r_pad, _round_up(-(-r_pad // blocks), granule))
    return max_tile


# ---------------------------------------------------------------------------
# public wrapper
# ---------------------------------------------------------------------------

def kmax_pooling(x: jax.Array, k: int, axis: int) -> jax.Array:
    """JAX/Pallas equivalent of KMaxPooling(k, axis).forward(x)."""
    nd = x.ndim
    if axis < 0 or axis >= nd:
        raise ValueError(f'axis must be 0~{nd - 1},now is {axis}')
    n = int(x.shape[axis])
    if k < 1 or k > n:
        raise ValueError('k must be in 1 ~ %d,now k is %d' % (n, k))

    dt = x.dtype
    if jnp.dtype(dt).itemsize > 4:
        # TODO(synk): 64-bit dtypes need a wide-compare path; refuse instead of
        # silently narrowing (overflow / precision loss).
        raise NotImplementedError('kmax_pooling: 64-bit dtypes are not supported')

    pre = int(np.prod(x.shape[:axis], dtype=np.int64))
    post = int(np.prod(x.shape[axis + 1:], dtype=np.int64))
    out_full_shape = x.shape[:axis] + (k,) + x.shape[axis + 1:]

    kernel = _select_kernel(dt, n, k, axis=1)     # reduction axis is dim 1 in both layouts
    tile_budget, limit_cap = _vmem_plan()
    itemsize = jnp.dtype(dt).itemsize
    # Per unit of work (one row / one lane-column): double-buffered input +
    # output blocks plus the in-kernel int32 key / iota / select temporaries.
    per_unit = 2 * n * itemsize + 2 * k * itemsize + 4 * n * 4 + 64

    if post == 1:
        # ---- lane-reduction layout: (rows, n), top-k along lanes -------------
        r = pre
        granule = _sublane_granule(dt)
        tile = _choose_row_tile(r, per_unit, granule, tile_budget)
        grid = (pl.cdiv(r, tile),)
        footprint = tile * per_unit
        vmem_limit = int(min(limit_cap, max(16 * 1024 * 1024, 2 * footprint)))
        out = pl.pallas_call(
            kernel,
            out_shape=jax.ShapeDtypeStruct((r, k), dt),
            grid=grid,
            in_specs=[pl.BlockSpec((tile, n), lambda i: (i, 0))],
            out_specs=pl.BlockSpec((tile, k), lambda i: (i, 0)),
            compiler_params=pltpu.CompilerParams(
                dimension_semantics=("parallel",),
                vmem_limit_bytes=vmem_limit),
        )(x.reshape(r, n))
    else:
        # ---- sublane-reduction layout: (pre, n, post), top-k along sublanes --
        # (free reshape; no moveaxis / HBM transpose of the input or the output)
        max_units = max(1, tile_budget // per_unit)          # max bt*pt footprint
        if post <= max_units:
            pt = post                                        # == full dim -> always legal
        else:
            pt = max(_LANE, (max_units // _LANE) * _LANE)    # lane-block multiple of 128
        bt = max(1, min(pre, max_units // max(pt, 1)))
        if pre > 1 and pl.cdiv(pre, bt) * pl.cdiv(post, pt) < 4:
            bt = max(1, min(bt, -(-pre // 4)))               # >=4-deep grid (megacore / pipeline)
        grid = (pl.cdiv(pre, bt), pl.cdiv(post, pt))
        footprint = bt * pt * per_unit
        vmem_limit = int(min(limit_cap, max(16 * 1024 * 1024, 2 * footprint)))
        out = pl.pallas_call(
            kernel,
            out_shape=jax.ShapeDtypeStruct((pre, k, post), dt),
            grid=grid,
            in_specs=[pl.BlockSpec((bt, n, pt), lambda i, j: (i, 0, j))],
            out_specs=pl.BlockSpec((bt, k, pt), lambda i, j: (i, 0, j)),
            compiler_params=pltpu.CompilerParams(
                dimension_semantics=("parallel", "parallel"),
                vmem_limit_bytes=vmem_limit),
        )(x.reshape(pre, n, post))

    return out.reshape(out_full_shape)


# ---------------------------------------------------------------------------
# reference + self-test
# ---------------------------------------------------------------------------

def _reference_topk(x, k, axis):
    xm = jnp.moveaxis(x, axis, -1)
    vals = jnp.flip(jnp.sort(xm, axis=-1), axis=-1)[..., :k]
    return jnp.moveaxis(vals, -1, axis)


if __name__ == "__main__":
    root = jax.random.PRNGKey(0)
    k1, k2, k3, k4, k5, k6, k7 = jax.random.split(root, 7)

    # sequence-style input: (batch=2, seq=8, hidden=32)
    x = jax.random.normal(k1, (2, 8, 32), dtype=jnp.float32)

    # 1) f32 along the sequence axis -> sublane-reduction layout (no transpose)
    out = jax.block_until_ready(kmax_pooling(x, k=4, axis=1))
    assert out.shape == (2, 4, 32) and out.dtype == x.dtype
    np.testing.assert_allclose(np.asarray(out), np.asarray(_reference_topk(x, 4, 1)),
                               rtol=1e-6, atol=1e-6)

    # 2) f32 along the last axis -> lane-reduction layout
    out = jax.block_until_ready(kmax_pooling(x, k=5, axis=2))
    assert out.shape == (2, 8, 5)
    np.testing.assert_allclose(np.asarray(out), np.asarray(_reference_topk(x, 5, 2)),
                               rtol=1e-6, atol=1e-6)

    # 3) f32 along axis 0
    x0 = jax.random.normal(k2, (8, 4, 16), dtype=jnp.float32)
    out = jax.block_until_ready(kmax_pooling(x0, k=2, axis=0))
    assert out.shape == (2, 4, 16)
    np.testing.assert_allclose(np.asarray(out), np.asarray(_reference_topk(x0, 2, 0)),
                               rtol=1e-6, atol=1e-6)

    # 4) bf16 -> packed single-XLU-reduction path (sublane layout)
    xb = jax.random.normal(k3, (2, 8, 32), dtype=jnp.bfloat16)
    out = jax.block_until_ready(kmax_pooling(xb, k=4, axis=1))
    assert out.dtype == jnp.bfloat16
    np.testing.assert_allclose(np.asarray(out, dtype=np.float32),
                               np.asarray(_reference_topk(xb, 4, 1), dtype=np.float32),
                               rtol=1e-6, atol=1e-6)

    # 5) int32 with duplicates -> integer pair path (lane layout)
    xi = jax.random.randint(k4, (4, 40), -50, 50, dtype=jnp.int32)
    out = jax.block_until_ready(kmax_pooling(xi, k=3, axis=1))
    np.testing.assert_array_equal(np.asarray(out), np.asarray(_reference_topk(xi, 3, 1)))

    # 6) int8 -> packed integer-key path (sublane layout)
    xi8 = jax.random.randint(k5, (2, 12, 8), -120, 120, dtype=jnp.int8)
    out = jax.block_until_ready(kmax_pooling(xi8, k=3, axis=1))
    assert out.dtype == jnp.int8
    np.testing.assert_array_equal(np.asarray(out), np.asarray(_reference_topk(xi8, 3, 1)))

    # 7) uint16 -> packed integer-key path (lane layout)
    xu = jax.random.randint(k6, (6, 40), 0, 60000, dtype=jnp.int32).astype(jnp.uint16)
    out = jax.block_until_ready(kmax_pooling(xu, k=4, axis=1))
    assert out.dtype == jnp.uint16
    np.testing.assert_array_equal(np.asarray(out), np.asarray(_reference_topk(xu, 4, 1)))

    # 8) larger k (still static-unrolled; direct column stores), f32 and bf16
    xl = jax.random.normal(k7, (4, 64), dtype=jnp.float32)
    out = jax.block_until_ready(kmax_pooling(xl, k=24, axis=1))
    np.testing.assert_allclose(np.asarray(out), np.asarray(_reference_topk(xl, 24, 1)),
                               rtol=1e-6, atol=1e-6)

    xlb = xl.astype(jnp.bfloat16)
    out = jax.block_until_ready(kmax_pooling(xlb, k=24, axis=1))
    np.testing.assert_allclose(np.asarray(out, dtype=np.float32),
                               np.asarray(_reference_topk(xlb, 24, 1), dtype=np.float32),
                               rtol=1e-6, atol=1e-6)

    print("KERNEL_OK")
</pallas_src>

<mosaic_0001>
module attributes {stable_mosaic.version = 11 : i64} {
  func.func @_kmax_kernel_pair(%arg0: i32, %arg1: i32, %arg2: memref<1x8x32xf32, #tpu.memory_space<vmem>>, %arg3: memref<1x4x32xf32, #tpu.memory_space<vmem>>) attributes {dimension_semantics = [#tpu.dimension_semantics<parallel>, #tpu.dimension_semantics<parallel>], iteration_bounds = array<i64: 2, 1>, scalar_prefetch = 0 : i64, scratch_operands = 0 : i64, tpu.core_type = #tpu.core_type<tc>, window_params = [{transform_indices = @transform_0, window_bounds = array<i64: 1, 8, 32>}, {transform_indices = @transform_1, window_bounds = array<i64: 1, 4, 32>}]} {
    %c0 = arith.constant 0 : index
    %c0_0 = arith.constant 0 : index
    %c0_1 = arith.constant 0 : index
    %0 = vector.load %arg2[%c0, %c0_0, %c0_1] : memref<1x8x32xf32, #tpu.memory_space<vmem>>, vector<1x8x32xf32>
    %1 = tpu.iota {dimensions = array<i32: 1>} : vector<1x8x32xi32>
    %cst = arith.constant dense<0xFF800000> : vector<1x32xf32>
    %2 = vector.multi_reduction <maximumf>, %0, %cst [1] : vector<1x8x32xf32> to vector<1x32xf32>
    %3 = vector.shape_cast %2 : vector<1x32xf32> to vector<1x1x32xf32>
    %4 = vector.broadcast %3 : vector<1x1x32xf32> to vector<1x8x32xf32>
    %5 = arith.cmpf oeq, %0, %4 : vector<1x8x32xf32>
    %c8_i32 = arith.constant 8 : i32
    %6 = vector.broadcast %c8_i32 : i32 to vector<1x8x32xi32>
    %7 = arith.select %5, %1, %6 : vector<1x8x32xi1>, vector<1x8x32xi32>
    %cst_2 = arith.constant dense<2147483647> : vector<1x32xi32>
    %8 = vector.multi_reduction <minsi>, %7, %cst_2 [1] : vector<1x8x32xi32> to vector<1x32xi32>
    %9 = vector.shape_cast %8 : vector<1x32xi32> to vector<1x1x32xi32>
    %c0_3 = arith.constant 0 : index
    %c0_4 = arith.constant 0 : index
    %c0_5 = arith.constant 0 : index
    %10 = vector.load %arg3[%c0_3, %c0_4, %c0_5] : memref<1x4x32xf32, #tpu.memory_space<vmem>>, vector<1x1x32xf32>
    tpu.vector_store %arg3[%c0_3, %c0_4, %c0_5], %3 {strides = array<i32>} : memref<1x4x32xf32, #tpu.memory_space<vmem>>, vector<1x1x32xf32>,
    %11 = vector.broadcast %9 : vector<1x1x32xi32> to vector<1x8x32xi32>
    %12 = arith.cmpi eq, %1, %11 : vector<1x8x32xi32>
    %cst_6 = arith.constant 0xFF800000 : f32
    %13 = vector.broadcast %cst_6 : f32 to vector<1x8x32xf32>
    %14 = arith.select %12, %13, %0 : vector<1x8x32xi1>, vector<1x8x32xf32>
    %cst_7 = arith.constant dense<0xFF800000> : vector<1x32xf32>
    %15 = vector.multi_reduction <maximumf>, %14, %cst_7 [1] : vector<1x8x32xf32> to vector<1x32xf32>
    %16 = vector.shape_cast %15 : vector<1x32xf32> to vector<1x1x32xf32>
    %17 = vector.broadcast %16 : vector<1x1x32xf32> to vector<1x8x32xf32>
    %18 = arith.cmpf oeq, %14, %17 : vector<1x8x32xf32>
    %c8_i32_8 = arith.constant 8 : i32
    %19 = vector.broadcast %c8_i32_8 : i32 to vector<1x8x32xi32>
    %20 = arith.select %18, %1, %19 : vector<1x8x32xi1>, vector<1x8x32xi32>
    %cst_9 = arith.constant dense<2147483647> : vector<1x32xi32>
    %21 = vector.multi_reduction <minsi>, %20, %cst_9 [1] : vector<1x8x32xi32> to vector<1x32xi32>
    %22 = vector.shape_cast %21 : vector<1x32xi32> to vector<1x1x32xi32>
    %c0_10 = arith.constant 0 : index
    %c1 = arith.constant 1 : index
    %c0_11 = arith.constant 0 : index
    %23 = vector.load %arg3[%c0_10, %c1, %c0_11] : memref<1x4x32xf32, #tpu.memory_space<vmem>>, vector<1x1x32xf32>
    tpu.vector_store %arg3[%c0_10, %c1, %c0_11], %16 {strides = array<i32>} : memref<1x4x32xf32, #tpu.memory_space<vmem>>, vector<1x1x32xf32>,
    %24 = vector.broadcast %22 : vector<1x1x32xi32> to vector<1x8x32xi32>
    %25 = arith.cmpi eq, %1, %24 : vector<1x8x32xi32>
    %cst_12 = arith.constant 0xFF800000 : f32
    %26 = vector.broadcast %cst_12 : f32 to vector<1x8x32xf32>
    %27 = arith.select %25, %26, %14 : vector<1x8x32xi1>, vector<1x8x32xf32>
    %cst_13 = arith.constant dense<0xFF800000> : vector<1x32xf32>
    %28 = vector.multi_reduction <maximumf>, %27, %cst_13 [1] : vector<1x8x32xf32> to vector<1x32xf32>
    %29 = vector.shape_cast %28 : vector<1x32xf32> to vector<1x1x32xf32>
    %30 = vector.broadcast %29 : vector<1x1x32xf32> to vector<1x8x32xf32>
    %31 = arith.cmpf oeq, %27, %30 : vector<1x8x32xf32>
    %c8_i32_14 = arith.constant 8 : i32
    %32 = vector.broadcast %c8_i32_14 : i32 to vector<1x8x32xi32>
    %33 = arith.select %31, %1, %32 : vector<1x8x32xi1>, vector<1x8x32xi32>
    %cst_15 = arith.constant dense<2147483647> : vector<1x32xi32>
    %34 = vector.multi_reduction <minsi>, %33, %cst_15 [1] : vector<1x8x32xi32> to vector<1x32xi32>
    %35 = vector.shape_cast %34 : vector<1x32xi32> to vector<1x1x32xi32>
    %c0_16 = arith.constant 0 : index
    %c2 = arith.constant 2 : index
    %c0_17 = arith.constant 0 : index
    %36 = vector.load %arg3[%c0_16, %c2, %c0_17] : memref<1x4x32xf32, #tpu.memory_space<vmem>>, vector<1x1x32xf32>
    tpu.vector_store %arg3[%c0_16, %c2, %c0_17], %29 {strides = array<i32>} : memref<1x4x32xf32, #tpu.memory_space<vmem>>, vector<1x1x32xf32>,
    %37 = vector.broadcast %35 : vector<1x1x32xi32> to vector<1x8x32xi32>
    %38 = arith.cmpi eq, %1, %37 : vector<1x8x32xi32>
    %cst_18 = arith.constant 0xFF800000 : f32
    %39 = vector.broadcast %cst_18 : f32 to vector<1x8x32xf32>
    %40 = arith.select %38, %39, %27 : vector<1x8x32xi1>, vector<1x8x32xf32>
    %cst_19 = arith.constant dense<0xFF800000> : vector<1x32xf32>
    %41 = vector.multi_reduction <maximumf>, %40, %cst_19 [1] : vector<1x8x32xf32> to vector<1x32xf32>
    %42 = vector.shape_cast %41 : vector<1x32xf32> to vector<1x1x32xf32>
    %c0_20 = arith.constant 0 : index
    %c3 = arith.constant 3 : index
    %c0_21 = arith.constant 0 : index
    %43 = vector.load %arg3[%c0_20, %c3, %c0_21] : memref<1x4x32xf32, #tpu.memory_space<vmem>>, vector<1x1x32xf32>
    tpu.vector_store %arg3[%c0_20, %c3, %c0_21], %42 {strides = array<i32>} : memref<1x4x32xf32, #tpu.memory_space<vmem>>, vector<1x1x32xf32>,
    return
  }
  func.func @transform_0(%arg0: i32, %arg1: i32) -> (i32, i32, i32) {
    %c0_i32 = arith.constant 0 : i32
    %c0_i32_0 = arith.constant 0 : i32
    return %arg0, %c0_i32, %arg1 : i32, i32, i32
  }
  func.func @transform_1(%arg0: i32, %arg1: i32) -> (i32, i32, i32) {
    %c0_i32 = arith.constant 0 : i32
    %c0_i32_0 = arith.constant 0 : i32
    return %arg0, %c0_i32, %arg1 : i32, i32, i32
  }
}

</mosaic_0001>

<bundles_post_ra>
// kernel: tpu_custom_call.1
= control target key start
LH: loop header
LB: loop body
LE: loop exit
PB: predicated region body
PF: predicated region fallthrough
CT: control target
= control target key end

     0   :  { %6 = vsyncpa [#allocation3], 0  ;;  %s723_s0 = inlined_call_operand.hbm [shape: f32[2,8,32], index: 0, kind: input, shape index: {}]   ;;  %s724_s1 = inlined_call_operand.hbm [shape: f32[2,4,32], index: 1, kind: output, shape index: {}]  }
   0x1   :  { %8 = vsyncpa [#allocation3 + $0x1], 0 }
   0x2   :  { %9 = vsyncpa [#allocation4], 0 }
   0x3   :  { %11 = vsyncpa [#allocation4 + $0x1], 0  ;;  %s524_s6 = smov 0   ;;  %s526_s7 = smov 0  }
   0x4   :  { %s528_s8 = smov 0   ;;  %s530_s9 = smov 0  }
   0x5   :  { %s532_s10 = smov 0   ;;  %s534_s11 = smov 0  }
   0x6 LB: > { %s323_s12 = sadd.s32 4294967295, %s510_s11   ;;  %s324_s13 = sadd.s32 4294967294, %s510_s11   ;;  %s510_s11 = sphi %s534_s11, %s17_s11   ;;  %s506_s10 = sphi %s532_s10, %s740_s10   ;;  %s502_s9 = sphi %s530_s9, %s739_s9   ;;  %s498_s8 = sphi %s528_s8, %s738_s8   ;;  %s494_s7 = sphi %s526_s7, %s737_s7   ;;  %s490_s6 = sphi %s524_s6, %s736_s6  }
   0x7   : > { %s29_s14 = sadd.s32 1, %s506_s10  ;;  %s38_s15 = sadd.s32 1, %s498_s8 }
   0x8   : > { %p31_p0 = scmp.ge.s32.totalorder %s29_s14, 2  ;;  %p45_p1 = scmp.ne.s32.totalorder %s498_s8, %s494_s7 }
   0x9   : > { %p46_p2 = scmp.eq.s32.totalorder %s510_s11, 0  ;;  %p51_p3 = scmp.ne.s32.totalorder %s494_s7, %s490_s6 }
   0xa   : > { %s742_s14 = smov (%p31_p0, %s29_s14), 0  ;;  %p52_p5 = scmp.eq.s32.totalorder %s323_s12, 0 }
   0xb   : > { %p565_p4 = por %p46_p2, %p45_p1  ;;  %s33_s17 = ssub.s32 %s506_s10, %s742_s14 }
   0xc   : > { %p77_p6 = scmp.eq.s32.totalorder %s323_s12, 1  ;;  %p36_p7 = scmp.eq.s32.totalorder %s33_s17, 0 }
   0xd   : > { %p571_p8 = por %p52_p5, %p51_p3  ;;  %p83_p10 = scmp.eq.s32.totalorder %s324_s13, 1 }
   0xe   : > { %p575_p9 = por %p77_p6, %p45_p1  ;;  %p348_p13 = scmp.lt.s32.totalorder %s510_s11, 2 }
   0xf   : > { %s580_s20 = scalar_select %p36_p7, %s498_s8, %s38_s15  }
  0x10   : > { %s728_s19 = scalar_select %p575_p9, 1, 0 }
  0x11   : > { %p582_p11 = por %p83_p10, %p51_p3  ;;  %s103_s22 = sand.u32 1, %s498_s8  }
  0x12   : > { %s327_s23 = sshll.u32 %s103_s22, 3  ;;  %s328_s24 = sshll.u32 %s506_s10, 7 }
  0x13   : > { %s729_s21 = scalar_select %p582_p11, 1, 0 }
  0x14   : > { %s593_s27 = scalar_lea.hbm %s723_s0, %s328_s24  ;;  %s107_s28 = scalar_lea.vmem [#allocation2], %s327_s23 }
  0x15   : > { %s115_s29 = sshll.u32 %s107_s28, 4  ;;  %p599_p0 = pnand %p348_p13, %p565_p4  ;;  %s595_s29 = int_to_ptr.vmem [resolvable:$true] %s115_s29 }
  0x16   : > { %s104_s2 = scalar_lea.sflag [#allocation3], %s103_s22  ;;  %s398_s3 = scalar_lea.hbm %s593_s27, 128 }
  0x17   : > { %p399_p3 = scmp.ne.s32.totalorder %s593_s27, %s398_s3  ;;  %p400_p5 = pneg %p599_p0 }
  0x18   : > { %s403_s12 = scalar_lea.hbm %s723_s0, 256  ;;  %p404_p4 = scmp.lt.u32.totalorder %s593_s27, %s723_s0 }
  0x19   : > { %p401_p6 = pnand %p400_p5, %p399_p3  ;;  %p405_p10 = scmp.lt.u32.totalorder %s403_s12, %s398_s3 }
  0x1a   : > { %p407_p12 = scmp.lt.u32.totalorder %s398_s3, %s593_s27 }
  0x1b   : > { %p402_p7 = pneg %p401_p6  ;;  %p406_p13 = por %p405_p10, %p404_p4 }
  0x1d   : > { %p408_p1 = por %p407_p12, %p406_p13 }
  0x1f   : > { %p409_p2 = pnand %p408_p1, %p402_p7 }
  0x21   : > { %412 = shalt.err (!%p409_p2)
}
  0x22   : > { %s413_s16 = scalar_lea.vmem %s595_s29, 128  ;;  %s512_s17 = smov [#allocation2]  }
  0x23   : > { %p414_p3 = scmp.ne.s32.totalorder %s595_s29, %s413_s16  ;;  %s418_s22 = sshll.u32 %s512_s17, 4  ;;  %s419_s22 = int_to_ptr.vmem [resolvable:$false] %s418_s22 }
  0x24   : > { %s420_s23 = scalar_lea.vmem %s419_s22, 256  ;;  %p421_p9 = scmp.lt.s32.totalorder %s595_s29, %s419_s22 }
  0x25   : > { %p416_p6 = pnand %p414_p3, %p400_p5  ;;  %p422_p4 = scmp.lt.s32.totalorder %s420_s23, %s413_s16 }
  0x27   : > { %p417_p11 = pneg %p416_p6  ;;  %p423_p10 = por %p422_p4, %p421_p9 }
  0x29   : > { %p424_p12 = pnand %p423_p10, %p417_p11 }
  0x2b   : > { %427 = shalt.err (!%p424_p12)
}
  0x2c   : > { %343 = dma.hbm_to_vmem [thread:$0]  (!%p599_p0), %s593_s27, 128, %s595_s29, %s104_s2  }
  0x2d   : > { %p731_p1 = scmp.lt.s32.totalorder %s510_s11, 3  ;;  %p732_p2 = scmp.ge.s32.totalorder %s510_s11, 1 }
  0x2f   : > { %p121_p5 = pnand %p732_p2, %p731_p1 }
  0x30   : > { %s635_s24 = sand.u32 (!%p121_p5), 1, %s494_s7  }
  0x31   : > { %124 = sbr.rel (%p121_p5) target bundleno = 175 (0xaf), region = 24  ;;  %s330_s25 = sshll.u32 (!%p121_p5), %s635_s24, 3 }
  0x32   : > { %s127_s26 = scalar_lea.sflag (!%p121_p5), [#allocation3], %s635_s24  ;;  %s130_s28 = scalar_lea.vmem (!%p121_p5), [#allocation2], %s330_s25 }
  0x38   : > { %481 = dma.done.wait (%p571_p8), %s127_s26, 128  }
  0x39   : > { %483 = vsyncadd (%p571_p8), %s127_s26, 4294967168  ;;  %vm152_vm0 = vcmask 261120   ;;  %v149_v0 = vld [vmem:[%s130_s28] sm:$0xff]  ;;  %v150_v5 = vlaneseq  ;;  %s331_s27 = sshll.u32 %s635_s24, 2  ;;  %vm172_vm1 = vcmask 253952   ;;  %s333_s30 = sshll.u32 %s502_s9, 6 }
  0x3a   : > { %v153_v1 = vsel %vm152_vm0, %v149_v0, -inf  ;;  %s647_s29 = scalar_lea.vmem [#allocation5], %s331_s27  ;;  %s674_s4 = scalar_lea.hbm %s724_s1, %s333_s30 }
  0x3b   : > { %v154_v2 = vrot.slane %v153_v1, 4  ;;  %v645_v8 = vshrl.u32 %v150_v5, 7  ;;  %s243_s18 = sshll.u32 %s647_s29, 4  ;;  %s229_s5 = scalar_lea.sflag [#allocation4], %s635_s24  ;;  %s669_s18 = int_to_ptr.vmem [resolvable:$true] %s243_s18 }
  0x3c   : > { %s428_s12 = scalar_lea.vmem %s669_s18, 64  ;;  %p733_p9 = scmp.ne.s32.totalorder %s728_s19, 0 }
  0x3d   : > { %v155_v3 = vmax.f32 %v153_v1, %v154_v2  ;;  %p429_p8 = scmp.ne.s32.totalorder %s669_s18, %s428_s12  ;;  %s513_s9 = smov [#allocation5]  }
  0x3e   : > { %s432_s13 = sshll.u32 %s513_s9, 4  ;;  %s433_s13 = int_to_ptr.vmem [resolvable:$false] %s432_s13 }
  0x3f   : > { %v156_v4 = vrot.slane %v155_v3, 2  ;;  %p430_p11 = pnand %p429_p8, %p733_p9  ;;  %s434_s15 = scalar_lea.vmem %s433_s13, 128 }
  0x40   : > { %p435_p7 = scmp.lt.s32.totalorder %s669_s18, %s433_s13  ;;  %p436_p13 = scmp.lt.s32.totalorder %s434_s15, %s428_s12 }
  0x41   : > { %v157_v6 = vmax.f32 %v155_v3, %v156_v4  ;;  %p431_p0 = pneg %p430_p11 }
  0x42   : > { %p437_p3 = por %p436_p13, %p435_p7 }
  0x43   : > { %v158_v7 = vrot.slane %v157_v6, 1 }
  0x44   : > { %p438_p6 = pnand %p437_p3, %p431_p0 }
  0x45   : > { %v159_v9 = vmax.f32 %v157_v6, %v158_v7 }
  0x47   : > { %vm160_vm2 = vcmp.eq.f32.partialorder %v149_v0, %v159_v9  ;;  %173 = vst.msk [vmem:[%s647_s29] sm:$0x1] %vm172_vm1, %v159_v9 }
  0x48   : > { %v161_v10 = vsel %vm160_vm2, %v645_v8, 8 }
  0x49   : > { %v162_v11 = vsel %vm152_vm0, %v161_v10, 2147483647 }
  0x4a   : > { %v163_v12 = vrot.slane %v162_v11, 4 }
  0x4c   : > { %vm164_vm3 = vcmp.lt.s32.totalorder %v162_v11, %v163_v12 }
  0x4d   : > { %v165_v13 = vsel %vm164_vm3, %v162_v11, %v163_v12 }
  0x4e   : > { %v166_v14 = vrot.slane %v165_v13, 2 }
  0x50   : > { %vm167_vm4 = vcmp.lt.s32.totalorder %v165_v13, %v166_v14 }
  0x51   : > { %v168_v15 = vsel %vm167_vm4, %v165_v13, %v166_v14 }
  0x52   : > { %v169_v16 = vrot.slane %v168_v15, 1 }
  0x54   : > { %vm170_vm5 = vcmp.lt.s32.totalorder %v168_v15, %v169_v16 }
  0x55   : > { %v171_v17 = vsel %vm170_vm5, %v168_v15, %v169_v16 }
  0x56   : > { %vm174_vm6 = vcmp.eq.s32.totalorder %v645_v8, %v171_v17 }
  0x57   : > { %v175_v18 = vsel %vm174_vm6, -inf, %v149_v0 }
  0x58   : > { %v176_v19 = vsel %vm152_vm0, %v175_v18, -inf }
  0x59   : > { %v177_v20 = vrot.slane %v176_v19, 4 }
  0x5b   : > { %v178_v21 = vmax.f32 %v176_v19, %v177_v20 }
  0x5d   : > { %v179_v22 = vrot.slane %v178_v21, 2 }
  0x5f   : > { %v180_v23 = vmax.f32 %v178_v21, %v179_v22 }
  0x61   : > { %v181_v24 = vrot.slane %v180_v23, 1 }
  0x63   : > { %v182_v25 = vmax.f32 %v180_v23, %v181_v24 }
  0x65   : > { %vm183_vm7 = vcmp.eq.f32.partialorder %v175_v18, %v182_v25  ;;  %195 = vst.msk [vmem:[%s647_s29 + $0x1] sm:$0x1] %vm172_vm1, %v182_v25 }
  0x66   : > { %v184_v26 = vsel %vm183_vm7, %v645_v8, 8 }
  0x67   : > { %v185_v27 = vsel %vm152_vm0, %v184_v26, 2147483647 }
  0x68   : > { %v186_v28 = vrot.slane %v185_v27, 4 }
  0x6a   : > { %vm187_vm8 = vcmp.lt.s32.totalorder %v185_v27, %v186_v28 }
  0x6b   : > { %v188_v29 = vsel %vm187_vm8, %v185_v27, %v186_v28 }
  0x6c   : > { %v189_v30 = vrot.slane %v188_v29, 2 }
  0x6e   : > { %vm190_vm9 = vcmp.lt.s32.totalorder %v188_v29, %v189_v30 }
  0x6f   : > { %v191_v31 = vsel %vm190_vm9, %v188_v29, %v189_v30 }
  0x70   : > { %v192_v32 = vrot.slane %v191_v31, 1 }
  0x72   : > { %vm193_vm10 = vcmp.lt.s32.totalorder %v191_v31, %v192_v32 }
  0x73   : > { %v194_v33 = vsel %vm193_vm10, %v191_v31, %v192_v32 }
  0x74   : > { %vm196_vm11 = vcmp.eq.s32.totalorder %v645_v8, %v194_v33 }
  0x75   : > { %v197_v34 = vsel %vm196_vm11, -inf, %v175_v18 }
  0x76   : > { %v198_v35 = vsel %vm152_vm0, %v197_v34, -inf }
  0x77   : > { %v199_v36 = vrot.slane %v198_v35, 4 }
  0x79   : > { %v200_v37 = vmax.f32 %v198_v35, %v199_v36 }
  0x7b   : > { %v201_v38 = vrot.slane %v200_v37, 2 }
  0x7d   : > { %v202_v39 = vmax.f32 %v200_v37, %v201_v38 }
  0x7f   : > { %v203_v40 = vrot.slane %v202_v39, 1 }
  0x81   : > { %v204_v41 = vmax.f32 %v202_v39, %v203_v40 }
  0x83   : > { %vm205_vm12 = vcmp.eq.f32.partialorder %v197_v34, %v204_v41  ;;  %217 = vst.msk [vmem:[%s647_s29 + $0x2] sm:$0x1] %vm172_vm1, %v204_v41 }
  0x84   : > { %v206_v42 = vsel %vm205_vm12, %v645_v8, 8 }
  0x85   : > { %v207_v43 = vsel %vm152_vm0, %v206_v42, 2147483647 }
  0x86   : > { %v208_v44 = vrot.slane %v207_v43, 4 }
  0x88   : > { %vm209_vm13 = vcmp.lt.s32.totalorder %v207_v43, %v208_v44 }
  0x89   : > { %v210_v45 = vsel %vm209_vm13, %v207_v43, %v208_v44 }
  0x8a   : > { %v211_v46 = vrot.slane %v210_v45, 2 }
  0x8c   : > { %vm212_vm14 = vcmp.lt.s32.totalorder %v210_v45, %v211_v46 }
  0x8d   : > { %v213_v47 = vsel %vm212_vm14, %v210_v45, %v211_v46 }
  0x8e   : > { %v214_v48 = vrot.slane %v213_v47, 1 }
  0x90   : > { %vm215_vm15 = vcmp.lt.s32.totalorder %v213_v47, %v214_v48 }
  0x91   : > { %v216_v49 = vsel %vm215_vm15, %v213_v47, %v214_v48 }
  0x92   : > { %vm218_vm2 = vcmp.eq.s32.totalorder %v645_v8, %v216_v49 }
  0x93   : > { %v219_v50 = vsel %vm218_vm2, -inf, %v197_v34 }
  0x94   : > { %v220_v51 = vsel %vm152_vm0, %v219_v50, -inf }
  0x95   : > { %v221_v52 = vrot.slane %v220_v51, 4 }
  0x97   : > { %v222_v53 = vmax.f32 %v220_v51, %v221_v52 }
  0x99   : > { %v223_v54 = vrot.slane %v222_v53, 2 }
  0x9b   : > { %v224_v55 = vmax.f32 %v222_v53, %v223_v54 }
  0x9d   : > { %v225_v56 = vrot.slane %v224_v55, 1 }
  0x9f   : > { %v226_v57 = vmax.f32 %v224_v55, %v225_v56 }
  0xa1   : > { %227 = vst.msk [vmem:[%s647_s29 + $0x3] sm:$0x1] %vm172_vm1, %v226_v57 }
  0xa2   : > { %441 = shalt.err (!%p438_p6)
}
  0xa3   : > { %s442_s16 = scalar_lea.hbm %s674_s4, 64  ;;  %s446_s23 = scalar_lea.hbm %s724_s1, 128 }
  0xa4   : > { %p443_p4 = scmp.ne.s32.totalorder %s674_s4, %s442_s16  ;;  %p447_p1 = scmp.lt.u32.totalorder %s674_s4, %s724_s1 }
  0xa5   : > { %p448_p2 = scmp.lt.u32.totalorder %s446_s23, %s442_s16  ;;  %p450_p8 = scmp.lt.u32.totalorder %s442_s16, %s674_s4 }
  0xa6   : > { %p444_p10 = pnand %p443_p4, %p733_p9 }
  0xa7   : > { %p449_p5 = por %p448_p2, %p447_p1 }
  0xa8   : > { %p445_p12 = pneg %p444_p10 }
  0xa9   : > { %p451_p11 = por %p450_p8, %p449_p5 }
  0xab   : > { %p452_p0 = pnand %p451_p11, %p445_p12 }
  0xad   : > { %455 = shalt.err (!%p452_p0)
}
  0xae   : > { %338 = dma.vmem_to_hbm [thread:$0]  (%p733_p9), %s669_s18, 64, %s674_s4, %s229_s5  }
  0xaf PF: > { %s255_s26 = sand.u32 1, %s490_s6   ;;  %p734_p7 = scmp.ne.s32.totalorder %s729_s21, 0 }
  0xb0   : > { %p735_p13 = scmp.ge.s32.totalorder %s510_s11, 2  ;;  %s256_s28 = scalar_lea.sflag [#allocation4], %s255_s26 }
  0xb2   : > { %p345_p3 = pnand %p735_p13, %p734_p7 }
  0xb4   : > { %485 = dma.done.wait (!%p345_p3), %s256_s28, 64  }
  0xb5   : > { %487 = vsyncadd (!%p345_p3), %s256_s28, 4294967232  ;;  %s17_s11 = sadd.s32 1, %s510_s11   ;;  %s736_s6 = smov %s494_s7 }
  0xb6   : > { %p14_p6 = scmp.ge.s32.totalorder %s17_s11, 4   ;;  %s737_s7 = smov %s498_s8 }
  0xb7   : > { %s738_s8 = smov %s580_s20  ;;  %s739_s9 = smov %s506_s10 }
  0xb8   : > { %s740_s10 = smov %s742_s14  ;;  %16 = sbr.rel (!%p14_p6) target bundleno = 6 (0x6), region = 69 }
  0xbf   :  { %261 = vsyncpa [#allocation3], 1 }
  0xc0   :  { %263 = vsyncpa [#allocation3 + $0x1], 1 }
  0xc1   :  { %264 = vsyncpa [#allocation4], 1 }
  0xc2   :  { %266 = vsyncpa [#allocation4 + $0x1], 1 }

</bundles_post_ra>
